<compile_context>
chip_gen: v7x
topology: tpu7x:2x2x1
jax: 0.10.0
libtpu: 0.0.40
codegen_flags: <defaults>
</compile_context>

<pallas_src>
import functools
import math

import jax
import jax.numpy as jnp
from jax.experimental import pallas as pl
from jax.experimental.pallas import tpu as pltpu


def _round_up(x, m):
    return ((x + m - 1) // m) * m


# ----------------------------- Pallas kernels ------------------------------

def _spatial_conv_stats_kernel(x_ref, w_ref, mask_ref, y_ref, stats_ref, *, kh, kw, wp):
    """Fused spatial (1,kh,kw) conv (im2col built in VMEM) + BN partial stats, one frame.

    x_ref:     (1, 1, Cin_p, Lf)       bf16 flattened, spatially zero-padded frame
    w_ref:     (Cm_p, kh*kw*Cin_p)     bf16 spatial weights, tap-major columns
    mask_ref:  (1, S_store)            f32  1.0 on valid output columns, 0.0 on garbage
    y_ref:     (1, 1, Cm_p, S_store)   bf16 conv output (channels on sublanes, space on lanes)
    stats_ref: (1, 1, Cm_p, 2)         f32  [sum, sum of squares] over valid columns

    The spatial-conv bias is intentionally omitted: the following training-mode
    BatchNorm subtracts the batch mean, which cancels it exactly.
    """
    f = x_ref[0, 0]                                        # (Cin_p, Lf)
    s_store = y_ref.shape[3]
    # im2col in VMEM: kh*kw shifted lane-slices stacked along the contraction axis.
    cols = jnp.concatenate(
        [f[:, dy * wp + dx: dy * wp + dx + s_store]
         for dy in range(kh) for dx in range(kw)], axis=0)  # (kh*kw*Cin_p, S_store)
    acc = jnp.dot(w_ref[...], cols,
                  preferred_element_type=jnp.float32)       # (Cm_p, S_store) f32
    y_ref[0, 0] = acc.astype(y_ref.dtype)                   # bf16 inter-stage tensor
    # per-tile BN partial statistics, garbage columns masked out
    masked = acc * mask_ref[...]
    s1 = jnp.sum(masked, axis=1, keepdims=True)             # (Cm_p, 1)
    s2 = jnp.sum(masked * acc, axis=1, keepdims=True)       # sum of squares on valid cols
    stats_ref[0, 0] = jnp.concatenate([s1, s2], axis=1)     # (Cm_p, 2)


def _temporal_fused_kernel(y_ref, w_ref, b_ref, scale_ref, shift_ref, o_ref):
    """Fused BatchNorm + ReLU + temporal (kt,1,1) conv as ONE matmul per block.

    y_ref:     (1, T, Cm_p, ts)    bf16 spatial-conv output (pre-BN)
    w_ref:     (Cout*To, T*Cm_p)   bf16 block-banded temporal weight matrix
    b_ref:     (Cout*To, 1)        f32  temporal bias (repeated per output frame)
    scale_ref: (Cm_p, 1)           f32  BN scale  (gamma / sqrt(var+eps))
    shift_ref: (Cm_p, 1)           f32  BN shift  (beta - mean*scale)
    o_ref:     (1, Cout*To, ts)    f32  output block (channels already leading)
    """
    t_in, cm_p = y_ref.shape[1], y_ref.shape[2]
    ts = y_ref.shape[3]
    x = y_ref[0].astype(jnp.float32)                               # (T, Cm_p, ts)
    a = jnp.maximum(x * scale_ref[...] + shift_ref[...], 0.0)      # BN + ReLU
    a = a.astype(jnp.bfloat16)
    # layout-preserving flatten (Cm_p is a multiple of 8): (T*Cm_p, ts)
    a_flat = a.reshape(t_in * cm_p, ts)
    o_ref[0] = (jnp.dot(w_ref[...], a_flat, preferred_element_type=jnp.float32)
                + b_ref[...])                                      # single dense store


# ----------------------------- Pallas wrappers -----------------------------

def spatial_conv_stats_pallas(xf, w_mat, mask, *, kh, kw, wp, cm_p, s_store, vmem_limit):
    """xf: (N, T, Cin_p, Lf) bf16 -> (y1 (N,T,Cm_p,S_store) bf16, stats (N,T,Cm_p,2) f32)."""
    n, t, cin_p, lf = xf.shape
    kernel = functools.partial(_spatial_conv_stats_kernel, kh=kh, kw=kw, wp=wp)
    # TODO(synk): for very large frames (Cm_p * S_store blocks near the VMEM budget),
    # add an S_store grid axis here exactly like the temporal kernel does.
    return pl.pallas_call(
        kernel,
        out_shape=(jax.ShapeDtypeStruct((n, t, cm_p, s_store), jnp.bfloat16),
                   jax.ShapeDtypeStruct((n, t, cm_p, 2), jnp.float32)),
        grid=(n, t),
        in_specs=[pl.BlockSpec((1, 1, cin_p, lf), lambda i, j: (i, j, 0, 0)),
                  pl.BlockSpec((cm_p, kh * kw * cin_p), lambda i, j: (0, 0)),
                  pl.BlockSpec((1, s_store), lambda i, j: (0, 0))],
        out_specs=(pl.BlockSpec((1, 1, cm_p, s_store), lambda i, j: (i, j, 0, 0)),
                   pl.BlockSpec((1, 1, cm_p, 2), lambda i, j: (i, j, 0, 0))),
        compiler_params=pltpu.CompilerParams(
            dimension_semantics=("parallel", "parallel"),
            vmem_limit_bytes=vmem_limit),
    )(xf, w_mat, mask)


def _pick_s_tile(s_store, n_batch, t, cm_p, m_out, budget_bytes=12 * 1024 * 1024):
    """Largest lane tile (multiple of 128, dividing s_store) that fits a conservative
    VMEM budget (below v5e's 16 MiB scoped default) and, when possible, leaves >= 4
    grid steps for pipelining / v7x 2-TensorCore load balance."""
    s128 = s_store // 128
    cands = [d * 128 for d in range(s128, 0, -1) if s128 % d == 0]
    # bytes per lane column: double-buffered bf16 input + f32 output blocks,
    # plus the in-kernel f32 upcast and bf16 activation copies.
    per_lane = t * cm_p * (2 * 2 + 4 + 2) + m_out * 4 * 2
    fitting = [ts for ts in cands if ts * per_lane <= budget_bytes] or [128]
    for ts in fitting:                      # descending: biggest tile with enough steps
        if n_batch * (s_store // ts) >= 4:
            return ts
    return fitting[-1]                      # otherwise smallest fitting -> most steps


def temporal_conv_bn_relu_pallas(y1, w_big, b_big, scale, shift, *, tile_s, vmem_limit):
    """y1: (N, T, Cm_p, S_store) bf16 -> z: (N, Cout*To, S_store) f32."""
    n, t, cm_p, s_store = y1.shape
    m_out = w_big.shape[0]
    return pl.pallas_call(
        _temporal_fused_kernel,
        out_shape=jax.ShapeDtypeStruct((n, m_out, s_store), jnp.float32),
        grid=(n, s_store // tile_s),
        in_specs=[pl.BlockSpec((1, t, cm_p, tile_s), lambda i, j: (i, 0, 0, j)),
                  pl.BlockSpec((m_out, t * cm_p), lambda i, j: (0, 0)),
                  pl.BlockSpec((m_out, 1), lambda i, j: (0, 0)),
                  pl.BlockSpec((cm_p, 1), lambda i, j: (0, 0)),
                  pl.BlockSpec((cm_p, 1), lambda i, j: (0, 0))],
        out_specs=pl.BlockSpec((1, m_out, tile_s), lambda i, j: (i, 0, j)),
        compiler_params=pltpu.CompilerParams(
            dimension_semantics=("parallel", "parallel"),
            vmem_limit_bytes=vmem_limit),
    )(y1, w_big, b_big, scale, shift)


# ----------------------- weight staging (tiny, in JAX) ----------------------

def _build_temporal_matrix(w_tp, cm, cm_p, kt, st, pt, t_in, t_out):
    """Scatter the (kt,1,1) temporal conv into a block-banded (Cout*To, T*Cm_p) matrix.

    TODO(synk): for long T this matrix is mostly zeros; exploit the banded structure
    (per-tap matmuls) instead of one dense matmul when T*Cm_p gets large.
    """
    cout = w_tp.shape[0]
    w2 = w_tp[:, :, :, 0, 0]                                  # (Cout, Cm, kt)
    wb = jnp.zeros((cout, t_out, t_in, cm_p), jnp.float32)
    for to in range(t_out):
        for dt in range(kt):
            ti = to * st + dt - pt
            if 0 <= ti < t_in:                                # frames outside = zero padding
                wb = wb.at[:, to, ti, :cm].set(w2[:, :, dt])
    return wb.reshape(cout * t_out, t_in * cm_p).astype(jnp.bfloat16)


# ----------------------------- forward pass --------------------------------

def spatio_temporal_conv(x, w_sp, b_sp, gamma, beta, w_tp, b_tp,
                         stride=(1, 1, 1), padding=(1, 1, 1), eps=1e-5,
                         vmem_limit=32 * 1024 * 1024):
    """R(2+1)D block forward (training-mode BatchNorm = batch statistics).

    x: (N, Cin, T, H, W) f32 -> (N, Cout, To, Ho, Wo) f32.
    b_sp is accepted for API parity but unused: the following BatchNorm subtracts
    the batch mean, which cancels the spatial-conv bias exactly (training mode only).
    """
    del b_sp
    n, cin, t, h, w = x.shape
    cm = w_sp.shape[0]
    kh, kw = w_sp.shape[3], w_sp.shape[4]
    cout, kt = w_tp.shape[0], w_tp.shape[2]
    st, sh, sw = stride
    pt, ph, pw = padding
    if (sh, sw) != (1, 1):
        # TODO(synk): spatial stride > 1 needs strided in-kernel tap slices.
        raise NotImplementedError("fused spatial kernel implemented for spatial stride 1")

    hp, wp = h + 2 * ph, w + 2 * pw
    ho, wo = hp - kh + 1, wp - kw + 1
    s_valid = ho * wp                           # padded-width output grid (cols x'>=wo are garbage)
    s_store = _round_up(s_valid, 128)           # lane-dense store width
    lf = s_store + (kh - 1) * wp + (kw - 1)     # flattened frame length incl. tap overhang
    cin_p = _round_up(cin, 8)
    cm_p = _round_up(cm, 8)

    # --- stage x once: (N,Cin,T,H,W) f32 -> (N,T,Cin_p,Lf) bf16 flattened padded frames ---
    xr = jnp.transpose(x, (0, 2, 1, 3, 4)).astype(jnp.bfloat16)
    xr = jnp.pad(xr, ((0, 0), (0, 0), (0, cin_p - cin), (ph, ph), (pw, pw)))
    xf = jnp.pad(xr.reshape(n, t, cin_p, hp * wp),
                 ((0, 0), (0, 0), (0, 0), (0, lf - hp * wp)))

    # spatial weights as (Cm_p, kh*kw*Cin_p), column order (dy, dx, c) to match the kernel
    w_mat = jnp.transpose(w_sp[:, :, 0], (0, 2, 3, 1))                  # (Cm, kh, kw, Cin)
    w_mat = jnp.pad(w_mat, ((0, cm_p - cm), (0, 0), (0, 0), (0, cin_p - cin)))
    w_mat = w_mat.reshape(cm_p, kh * kw * cin_p).astype(jnp.bfloat16)

    # valid-column mask over the padded-width output grid (excludes garbage columns)
    q = jnp.arange(s_store, dtype=jnp.int32)
    mask = (((q % wp) < wo) & (q < s_valid)).astype(jnp.float32).reshape(1, s_store)

    y1, stats = spatial_conv_stats_pallas(xf, w_mat, mask, kh=kh, kw=kw, wp=wp,
                                          cm_p=cm_p, s_store=s_store,
                                          vmem_limit=vmem_limit)

    # --- finalize BatchNorm batch statistics (tiny (Cm_p, 2) reduce in JAX) ---
    count = n * t * ho * wo
    tot = jnp.sum(stats, axis=(0, 1))                     # (Cm_p, 2)
    mean = tot[:, 0] / count
    var = tot[:, 1] / count - mean * mean                 # biased, as torch BN normalization
    gamma_p = jnp.pad(gamma, (0, cm_p - cm))              # zero gamma on padded channels
    beta_p = jnp.pad(beta, (0, cm_p - cm))
    scale = gamma_p / jnp.sqrt(var + eps)
    shift = beta_p - mean * scale

    # --- fused BN + ReLU + temporal (kt,1,1) conv, lane-tiled over the spatial axis ---
    t_out = (t + 2 * pt - kt) // st + 1
    w_big = _build_temporal_matrix(w_tp, cm, cm_p, kt, st, pt, t, t_out)   # (Cout*To, T*Cm_p)
    b_big = jnp.repeat(b_tp, t_out).reshape(cout * t_out, 1).astype(jnp.float32)
    tile_s = _pick_s_tile(s_store, n, t, cm_p, cout * t_out)
    z = temporal_conv_bn_relu_pallas(
        y1, w_big, b_big,
        scale.reshape(cm_p, 1).astype(jnp.float32),
        shift.reshape(cm_p, 1).astype(jnp.float32),
        tile_s=tile_s, vmem_limit=vmem_limit)

    # --- extract valid columns into NCDHW (channels already leading: no transpose) ---
    # TODO(synk): this single slice+reshape pass disappears entirely if downstream
    # accepts the (N, Cout, To, Ho*Wo)-flattened layout.
    out = z[:, :, :s_valid].reshape(n, cout, t_out, ho, wp)[:, :, :, :, :wo]
    return out


# ------------------------------ reference ----------------------------------

def reference_forward(x, w_sp, b_sp, gamma, beta, w_tp, b_tp, stride, padding, eps=1e-5):
    st, sh, sw = stride
    pt, ph, pw = padding
    dn = ('NCDHW', 'OIDHW', 'NCDHW')
    y = jax.lax.conv_general_dilated(
        x, w_sp, (1, sh, sw), [(0, 0), (ph, ph), (pw, pw)],
        dimension_numbers=dn, precision=jax.lax.Precision.HIGHEST)
    y = y + b_sp.reshape(1, -1, 1, 1, 1)
    mean = jnp.mean(y, axis=(0, 2, 3, 4), keepdims=True)
    var = jnp.var(y, axis=(0, 2, 3, 4), keepdims=True)
    y = (y - mean) / jnp.sqrt(var + eps)
    y = y * gamma.reshape(1, -1, 1, 1, 1) + beta.reshape(1, -1, 1, 1, 1)
    y = jnp.maximum(y, 0.0)
    z = jax.lax.conv_general_dilated(
        y, w_tp, (st, 1, 1), [(pt, pt), (0, 0), (0, 0)],
        dimension_numbers=dn, precision=jax.lax.Precision.HIGHEST)
    return z + b_tp.reshape(1, -1, 1, 1, 1)


# -------------------------------- main --------------------------------------

if __name__ == "__main__":
    # module config (matches SpatioTemporalConv(4, 8, 3, stride=1, padding=1))
    in_channels, out_channels = 4, 8
    kernel_size = (3, 3, 3)
    stride = (1, 1, 1)
    padding = (1, 1, 1)
    kt, kh, kw = kernel_size
    intermed = int(math.floor(
        kt * kh * kw * in_channels * out_channels
        / (kh * kw * in_channels + kt * out_channels)))       # = 14 here

    # small deterministic example input: (N, C, T, H, W)
    N, T, H, W = 2, 8, 16, 16
    key = jax.random.PRNGKey(0)
    k1, k2, k3, k4, k5 = jax.random.split(key, 5)
    w_sp = 0.1 * jax.random.normal(k1, (intermed, in_channels, 1, kh, kw), jnp.float32)
    b_sp = 0.1 * jax.random.normal(k2, (intermed,), jnp.float32)
    w_tp = 0.1 * jax.random.normal(k3, (out_channels, intermed, kt, 1, 1), jnp.float32)
    b_tp = 0.1 * jax.random.normal(k4, (out_channels,), jnp.float32)
    gamma = jnp.ones((intermed,), jnp.float32)   # BatchNorm3d default init
    beta = jnp.zeros((intermed,), jnp.float32)
    x = jax.random.normal(k5, (N, in_channels, T, H, W), jnp.float32)

    fwd = jax.jit(functools.partial(spatio_temporal_conv,
                                    stride=stride, padding=padding))
    out = jax.block_until_ready(fwd(x, w_sp, b_sp, gamma, beta, w_tp, b_tp))

    ref = jax.block_until_ready(
        reference_forward(x, w_sp, b_sp, gamma, beta, w_tp, b_tp, stride, padding))

    assert out.shape == ref.shape == (N, out_channels, T, H, W), (out.shape, ref.shape)
    max_err = float(jnp.max(jnp.abs(out - ref)))
    # kernels use single-pass bf16 MXU matmuls and a bf16 inter-stage tensor vs. an
    # f32 HIGHEST-precision reference, hence the relaxed tolerance
    assert jnp.allclose(out, ref, atol=2e-2, rtol=2e-2), max_err

    print("KERNEL_OK")
</pallas_src>

<mosaic_0001>
module attributes {stable_mosaic.version = 11 : i64} {
  func.func @_spatial_conv_stats_kernel(%arg0: i32, %arg1: i32, %arg2: memref<1x1x8x422xbf16, #tpu.memory_space<vmem>>, %arg3: memref<16x72xbf16, #tpu.memory_space<vmem>>, %arg4: memref<1x384xf32, #tpu.memory_space<vmem>>, %arg5: memref<1x1x16x384xbf16, #tpu.memory_space<vmem>>, %arg6: memref<1x1x16x2xf32, #tpu.memory_space<vmem>>) attributes {dimension_semantics = [#tpu.dimension_semantics<parallel>, #tpu.dimension_semantics<parallel>], iteration_bounds = array<i64: 2, 8>, scalar_prefetch = 0 : i64, scratch_operands = 0 : i64, tpu.core_type = #tpu.core_type<tc>, window_params = [{transform_indices = @transform_0, window_bounds = array<i64: 1, 1, 8, 422>}, {pipeline_mode = #tpu.pipeline_mode<synchronous>, transform_indices = @transform_1, window_bounds = array<i64: 16, 72>}, {pipeline_mode = #tpu.pipeline_mode<synchronous>, transform_indices = @transform_2, window_bounds = array<i64: 1, 384>}, {transform_indices = @transform_3, window_bounds = array<i64: 1, 1, 16, 384>}, {transform_indices = @transform_4, window_bounds = array<i64: 1, 1, 16, 2>}]} {
    %c0 = arith.constant 0 : index
    %c0_0 = arith.constant 0 : index
    %c0_1 = arith.constant 0 : index
    %c0_2 = arith.constant 0 : index
    %0 = vector.load %arg2[%c0, %c0_0, %c0_1, %c0_2] : memref<1x1x8x422xbf16, #tpu.memory_space<vmem>>, vector<1x1x8x422xbf16>
    %1 = vector.shape_cast %0 : vector<1x1x8x422xbf16> to vector<8x422xbf16>
    %2 = vector.extract_strided_slice %1 {offsets = [0, 0], sizes = [8, 384], strides = [1, 1]} : vector<8x422xbf16> to vector<8x384xbf16>
    %3 = vector.extract_strided_slice %1 {offsets = [0, 1], sizes = [8, 384], strides = [1, 1]} : vector<8x422xbf16> to vector<8x384xbf16>
    %4 = vector.extract_strided_slice %1 {offsets = [0, 2], sizes = [8, 384], strides = [1, 1]} : vector<8x422xbf16> to vector<8x384xbf16>
    %5 = vector.extract_strided_slice %1 {offsets = [0, 18], sizes = [8, 384], strides = [1, 1]} : vector<8x422xbf16> to vector<8x384xbf16>
    %6 = vector.extract_strided_slice %1 {offsets = [0, 19], sizes = [8, 384], strides = [1, 1]} : vector<8x422xbf16> to vector<8x384xbf16>
    %7 = vector.extract_strided_slice %1 {offsets = [0, 20], sizes = [8, 384], strides = [1, 1]} : vector<8x422xbf16> to vector<8x384xbf16>
    %8 = vector.extract_strided_slice %1 {offsets = [0, 36], sizes = [8, 384], strides = [1, 1]} : vector<8x422xbf16> to vector<8x384xbf16>
    %9 = vector.extract_strided_slice %1 {offsets = [0, 37], sizes = [8, 384], strides = [1, 1]} : vector<8x422xbf16> to vector<8x384xbf16>
    %10 = vector.extract_strided_slice %1 {offsets = [0, 38], sizes = [8, 384], strides = [1, 1]} : vector<8x422xbf16> to vector<8x384xbf16>
    %11 = tpu.concatenate %2, %3, %4, %5, %6, %7, %8, %9, %10 in 0 : vector<8x384xbf16>, vector<8x384xbf16>, vector<8x384xbf16>, vector<8x384xbf16>, vector<8x384xbf16>, vector<8x384xbf16>, vector<8x384xbf16>, vector<8x384xbf16>, vector<8x384xbf16> -> vector<72x384xbf16>
    %c0_3 = arith.constant 0 : index
    %c0_4 = arith.constant 0 : index
    %12 = vector.load %arg3[%c0_3, %c0_4] : memref<16x72xbf16, #tpu.memory_space<vmem>>, vector<16x72xbf16>
    %cst = arith.constant dense<0.000000e+00> : vector<16x384xf32>
    %13 = tpu.matmul %12, %11, %cst {dimension_numbers = #tpu.dot_dimension_numbers<[1], [0], [0], [1], [0, 0, 1, 1], [], []>} : vector<16x72xbf16>, vector<72x384xbf16>, vector<16x384xf32> -> vector<16x384xf32>
    %14 = arith.truncf %13 : vector<16x384xf32> to vector<16x384xbf16>
    %c0_5 = arith.constant 0 : index
    %c0_6 = arith.constant 0 : index
    %c0_7 = arith.constant 0 : index
    %c0_8 = arith.constant 0 : index
    %15 = vector.load %arg5[%c0_5, %c0_6, %c0_7, %c0_8] : memref<1x1x16x384xbf16, #tpu.memory_space<vmem>>, vector<1x1x16x384xbf16>
    %16 = vector.shape_cast %15 : vector<1x1x16x384xbf16> to vector<16x384xbf16>
    %17 = vector.shape_cast %14 : vector<16x384xbf16> to vector<1x1x16x384xbf16>
    tpu.vector_store %arg5[%c0_5, %c0_6, %c0_7, %c0_8], %17 {strides = array<i32>} : memref<1x1x16x384xbf16, #tpu.memory_space<vmem>>, vector<1x1x16x384xbf16>,
    %c0_9 = arith.constant 0 : index
    %c0_10 = arith.constant 0 : index
    %18 = vector.load %arg4[%c0_9, %c0_10] : memref<1x384xf32, #tpu.memory_space<vmem>>, vector<1x384xf32>
    %19 = vector.broadcast %18 : vector<1x384xf32> to vector<16x384xf32>
    %20 = arith.mulf %13, %19 : vector<16x384xf32>
    %cst_11 = arith.constant dense<0.000000e+00> : vector<16xf32>
    %21 = vector.multi_reduction <add>, %20, %cst_11 [1] : vector<16x384xf32> to vector<16xf32>
    %22 = vector.shape_cast %21 : vector<16xf32> to vector<16x1xf32>
    %23 = arith.mulf %20, %13 : vector<16x384xf32>
    %cst_12 = arith.constant dense<0.000000e+00> : vector<16xf32>
    %24 = vector.multi_reduction <add>, %23, %cst_12 [1] : vector<16x384xf32> to vector<16xf32>
    %25 = vector.shape_cast %24 : vector<16xf32> to vector<16x1xf32>
    %26 = tpu.concatenate %22, %25 in 1 : vector<16x1xf32>, vector<16x1xf32> -> vector<16x2xf32>
    %c0_13 = arith.constant 0 : index
    %c0_14 = arith.constant 0 : index
    %c0_15 = arith.constant 0 : index
    %c0_16 = arith.constant 0 : index
    %27 = vector.load %arg6[%c0_13, %c0_14, %c0_15, %c0_16] : memref<1x1x16x2xf32, #tpu.memory_space<vmem>>, vector<1x1x16x2xf32>
    %28 = vector.shape_cast %27 : vector<1x1x16x2xf32> to vector<16x2xf32>
    %29 = vector.shape_cast %26 : vector<16x2xf32> to vector<1x1x16x2xf32>
    tpu.vector_store %arg6[%c0_13, %c0_14, %c0_15, %c0_16], %29 {strides = array<i32>} : memref<1x1x16x2xf32, #tpu.memory_space<vmem>>, vector<1x1x16x2xf32>,
    return
  }
  func.func @transform_0(%arg0: i32, %arg1: i32) -> (i32, i32, i32, i32) {
    %c0_i32 = arith.constant 0 : i32
    %c0_i32_0 = arith.constant 0 : i32
    %c0_i32_1 = arith.constant 0 : i32
    return %arg0, %arg1, %c0_i32, %c0_i32_0 : i32, i32, i32, i32
  }
  func.func @transform_1(%arg0: i32, %arg1: i32) -> (i32, i32) {
    %c0_i32 = arith.constant 0 : i32
    %c0_i32_0 = arith.constant 0 : i32
    %c0_i32_1 = arith.constant 0 : i32
    return %c0_i32, %c0_i32_0 : i32, i32
  }
  func.func @transform_2(%arg0: i32, %arg1: i32) -> (i32, i32) {
    %c0_i32 = arith.constant 0 : i32
    %c0_i32_0 = arith.constant 0 : i32
    %c0_i32_1 = arith.constant 0 : i32
    return %c0_i32, %c0_i32_0 : i32, i32
  }
  func.func @transform_3(%arg0: i32, %arg1: i32) -> (i32, i32, i32, i32) {
    %c0_i32 = arith.constant 0 : i32
    %c0_i32_0 = arith.constant 0 : i32
    %c0_i32_1 = arith.constant 0 : i32
    return %arg0, %arg1, %c0_i32, %c0_i32_0 : i32, i32, i32, i32
  }
  func.func @transform_4(%arg0: i32, %arg1: i32) -> (i32, i32, i32, i32) {
    %c0_i32 = arith.constant 0 : i32
    %c0_i32_0 = arith.constant 0 : i32
    %c0_i32_1 = arith.constant 0 : i32
    return %arg0, %arg1, %c0_i32, %c0_i32_0 : i32, i32, i32, i32
  }
}

module attributes {stable_mosaic.version = 11 : i64} {
  func.func @_temporal_fused_kernel(%arg0: i32, %arg1: i32, %arg2: memref<1x8x16x128xbf16, #tpu.memory_space<vmem>>, %arg3: memref<64x128xbf16, #tpu.memory_space<vmem>>, %arg4: memref<64x1xf32, #tpu.memory_space<vmem>>, %arg5: memref<16x1xf32, #tpu.memory_space<vmem>>, %arg6: memref<16x1xf32, #tpu.memory_space<vmem>>, %arg7: memref<1x64x128xf32, #tpu.memory_space<vmem>>) attributes {dimension_semantics = [#tpu.dimension_semantics<parallel>, #tpu.dimension_semantics<parallel>], iteration_bounds = array<i64: 2, 3>, scalar_prefetch = 0 : i64, scratch_operands = 0 : i64, tpu.core_type = #tpu.core_type<tc>, window_params = [{transform_indices = @transform_0, window_bounds = array<i64: 1, 8, 16, 128>}, {pipeline_mode = #tpu.pipeline_mode<synchronous>, transform_indices = @transform_1, window_bounds = array<i64: 64, 128>}, {pipeline_mode = #tpu.pipeline_mode<synchronous>, transform_indices = @transform_2, window_bounds = array<i64: 64, 1>}, {pipeline_mode = #tpu.pipeline_mode<synchronous>, transform_indices = @transform_3, window_bounds = array<i64: 16, 1>}, {pipeline_mode = #tpu.pipeline_mode<synchronous>, transform_indices = @transform_4, window_bounds = array<i64: 16, 1>}, {transform_indices = @transform_5, window_bounds = array<i64: 1, 64, 128>}]} {
    %c0 = arith.constant 0 : index
    %c0_0 = arith.constant 0 : index
    %c0_1 = arith.constant 0 : index
    %c0_2 = arith.constant 0 : index
    %0 = vector.load %arg2[%c0, %c0_0, %c0_1, %c0_2] : memref<1x8x16x128xbf16, #tpu.memory_space<vmem>>, vector<1x8x16x128xbf16>
    %1 = vector.shape_cast %0 : vector<1x8x16x128xbf16> to vector<8x16x128xbf16>
    %2 = arith.extf %1 : vector<8x16x128xbf16> to vector<8x16x128xf32>
    %c0_3 = arith.constant 0 : index
    %c0_4 = arith.constant 0 : index
    %3 = vector.load %arg5[%c0_3, %c0_4] : memref<16x1xf32, #tpu.memory_space<vmem>>, vector<16x1xf32>
    %4 = vector.shape_cast %3 : vector<16x1xf32> to vector<1x16x1xf32>
    %5 = vector.broadcast %4 : vector<1x16x1xf32> to vector<8x16x128xf32>
    %6 = arith.mulf %2, %5 : vector<8x16x128xf32>
    %c0_5 = arith.constant 0 : index
    %c0_6 = arith.constant 0 : index
    %7 = vector.load %arg6[%c0_5, %c0_6] : memref<16x1xf32, #tpu.memory_space<vmem>>, vector<16x1xf32>
    %8 = vector.shape_cast %7 : vector<16x1xf32> to vector<1x16x1xf32>
    %9 = vector.broadcast %8 : vector<1x16x1xf32> to vector<8x16x128xf32>
    %10 = arith.addf %6, %9 : vector<8x16x128xf32>
    %cst = arith.constant 0.000000e+00 : f32
    %11 = vector.broadcast %cst : f32 to vector<8x16x128xf32>
    %12 = arith.maximumf %10, %11 : vector<8x16x128xf32>
    %13 = arith.truncf %12 : vector<8x16x128xf32> to vector<8x16x128xbf16>
    %14 = vector.shape_cast %13 : vector<8x16x128xbf16> to vector<128x128xbf16>
    %c0_7 = arith.constant 0 : index
    %c0_8 = arith.constant 0 : index
    %15 = vector.load %arg3[%c0_7, %c0_8] : memref<64x128xbf16, #tpu.memory_space<vmem>>, vector<64x128xbf16>
    %cst_9 = arith.constant dense<0.000000e+00> : vector<64x128xf32>
    %16 = tpu.matmul %15, %14, %cst_9 {dimension_numbers = #tpu.dot_dimension_numbers<[1], [0], [0], [1], [0, 0, 1, 1], [], []>} : vector<64x128xbf16>, vector<128x128xbf16>, vector<64x128xf32> -> vector<64x128xf32>
    %c0_10 = arith.constant 0 : index
    %c0_11 = arith.constant 0 : index
    %17 = vector.load %arg4[%c0_10, %c0_11] : memref<64x1xf32, #tpu.memory_space<vmem>>, vector<64x1xf32>
    %18 = vector.broadcast %17 : vector<64x1xf32> to vector<64x128xf32>
    %19 = arith.addf %16, %18 : vector<64x128xf32>
    %c0_12 = arith.constant 0 : index
    %c0_13 = arith.constant 0 : index
    %c0_14 = arith.constant 0 : index
    %20 = vector.load %arg7[%c0_12, %c0_13, %c0_14] : memref<1x64x128xf32, #tpu.memory_space<vmem>>, vector<1x64x128xf32>
    %21 = vector.shape_cast %20 : vector<1x64x128xf32> to vector<64x128xf32>
    %22 = vector.shape_cast %19 : vector<64x128xf32> to vector<1x64x128xf32>
    tpu.vector_store %arg7[%c0_12, %c0_13, %c0_14], %22 {strides = array<i32>} : memref<1x64x128xf32, #tpu.memory_space<vmem>>, vector<1x64x128xf32>,
    return
  }
  func.func @transform_0(%arg0: i32, %arg1: i32) -> (i32, i32, i32, i32) {
    %c0_i32 = arith.constant 0 : i32
    %c0_i32_0 = arith.constant 0 : i32
    %c0_i32_1 = arith.constant 0 : i32
    return %arg0, %c0_i32, %c0_i32_0, %arg1 : i32, i32, i32, i32
  }
  func.func @transform_1(%arg0: i32, %arg1: i32) -> (i32, i32) {
    %c0_i32 = arith.constant 0 : i32
    %c0_i32_0 = arith.constant 0 : i32
    %c0_i32_1 = arith.constant 0 : i32
    return %c0_i32, %c0_i32_0 : i32, i32
  }
  func.func @transform_2(%arg0: i32, %arg1: i32) -> (i32, i32) {
    %c0_i32 = arith.constant 0 : i32
    %c0_i32_0 = arith.constant 0 : i32
    %c0_i32_1 = arith.constant 0 : i32
    return %c0_i32, %c0_i32_0 : i32, i32
  }
  func.func @transform_3(%arg0: i32, %arg1: i32) -> (i32, i32) {
    %c0_i32 = arith.constant 0 : i32
    %c0_i32_0 = arith.constant 0 : i32
    %c0_i32_1 = arith.constant 0 : i32
    return %c0_i32, %c0_i32_0 : i32, i32
  }
  func.func @transform_4(%arg0: i32, %arg1: i32) -> (i32, i32) {
    %c0_i32 = arith.constant 0 : i32
    %c0_i32_0 = arith.constant 0 : i32
    %c0_i32_1 = arith.constant 0 : i32
    return %c0_i32, %c0_i32_0 : i32, i32
  }
  func.func @transform_5(%arg0: i32, %arg1: i32) -> (i32, i32, i32) {
    %c0_i32 = arith.constant 0 : i32
    %c0_i32_0 = arith.constant 0 : i32
    return %arg0, %c0_i32, %arg1 : i32, i32, i32
  }
}

</mosaic_0001>

<bundles_post_ra>
// kernel: spatio_temporal_conv.3
= control target key start
LH: loop header
LB: loop body
LE: loop exit
PB: predicated region body
PF: predicated region fallthrough
CT: control target
= control target key end

     0   :  { %s1007_s18 = smov 0   ;;  %s1009_s19 = smov 0   ;;  %s1223_s0 = inlined_call_operand.vmem [shape: bf16[2,8,16,384], index: 0, kind: input, shape index: {}]   ;;  %s1224_s1 = inlined_call_operand.vmem [shape: bf16[64,128], index: 1, kind: input, shape index: {}]   ;;  %s1225_s2 = inlined_call_operand.vmem [shape: f32[64,1], index: 2, kind: input, shape index: {}]   ;;  %s1226_s3 = inlined_call_operand.vmem [shape: f32[16,1], index: 3, kind: input, shape index: {}]   ;;  %s1227_s4 = inlined_call_operand.vmem [shape: f32[16,1], index: 4, kind: input, shape index: {}]   ;;  %s1228_s5 = inlined_call_operand.vmem [shape: f32[2,64,384], index: 5, kind: output, shape index: {}]  }
   0x1   :  { %s1011_s20 = smov 0   ;;  %s1013_s21 = smov 0  }
   0x2   :  { %s1015_s22 = smov 0   ;;  %s1017_s23 = smov 0  }
   0x3   :  { %s1019_s24 = smov 0  }
   0x4 LB: > { %s24_s25 = sadd.s32 1, %s966_s22  ;;  %s27_s26 = sadd.s32 1, %s970_s23  ;;  %s974_s24 = sphi %s1019_s24, %s15_s24   ;;  %s970_s23 = sphi %s1017_s23, %s1235_s23   ;;  %s966_s22 = sphi %s1015_s22, %s1234_s22   ;;  %s962_s21 = sphi %s1013_s21, %s1233_s21   ;;  %s958_s20 = sphi %s1011_s20, %s1232_s20   ;;  %s954_s19 = sphi %s1009_s19, %s1231_s19   ;;  %s950_s18 = sphi %s1007_s18, %s1230_s18  }
   0x5   : > { %p25_p0 = scmp.ge.s32.totalorder %s24_s25, 3  ;;  %s747_s27 = sadd.s32 4294967295, %s974_s24  }
   0x6   : > { %p43_p1 = scmp.ne.s32.totalorder %s954_s19, %s950_s18  ;;  %p44_p2 = scmp.eq.s32.totalorder %s974_s24, 0 }
   0x7   : > { %s1237_s25 = smov (%p25_p0, %s24_s25), 0  ;;  %s1239_s26 = smov (!%p25_p0, %s27_s26), %s970_s23 }
   0x8   : > { %p29_p3 = scmp.ge.s32.totalorder %s1239_s26, 2  ;;  %p159_p4 = scmp.eq.s32.totalorder %s747_s27, 5 }
   0x9   : > { %s32_s28 = ssub.s32 %s966_s22, %s1237_s25  ;;  %p45_p5 = por %p44_p2, %p43_p1 }
   0xa   : > { %s1241_s26 = smov (%p29_p3, %s1239_s26), 0  ;;  %p1055_p6 = por %p159_p4, %p43_p1 }
   0xb   : > { %s31_s30 = ssub.s32 %s970_s23, %s1241_s26  ;;  %s36_s7 = sadd.s32 1, %s954_s19 }
   0xc   : > { %s33_s6 = sor.u32 %s32_s28, %s31_s30  ;;  %p750_p8 = scmp.ge.s32.totalorder %s974_s24, 6 }
   0xd   : > { %p34_p7 = scmp.eq.s32.totalorder %s33_s6, 0 }
   0xe   : > { %193 = sbr.rel (%p750_p8) target bundleno = 38 (0x26), region = 32 }
   0xf   : > { %s1063_s8 = scalar_select %p34_p7, %s954_s19, %s36_s7  }
  0x15   : > { %196 = sbr.rel (!%p45_p5) target bundleno = 38 (0x26), region = 36  ;;  %s198_s9 = sand.u32 (%p45_p5), 1, %s954_s19  }
  0x16   : > { %s855_s10 = smul.u32 (%p45_p5), 48, %s970_s23  ;;  %s751_s11 = sshll.u32 (%p45_p5), %s198_s9, 6 }
  0x17   : > { %s200_s17 = scalar_lea.vmem (%p45_p5), [#allocation2], %s751_s11 }
  0x18   : > { %s202_s12 = sadd.s32 (%p45_p5), %s966_s22, %s855_s10 }
  0x19   : > { %s752_s13 = sshll.u32 (%p45_p5), %s202_s12, 2 }
  0x1a   : > { %s1072_s16 = scalar_lea.vmem (%p45_p5), %s1223_s0, %s752_s13 }
  0x1b   : > { %v220_v0 = vld [vmem:[%s1072_s16] sm:$0xf] (%p45_p5)  ;;  %v222_v1 = vld [vmem:[%s1072_s16 + $0xc] sm:$0xf] (%p45_p5)  ;;  %v224_v2 = vld [vmem:[%s1072_s16 + $0x18] sm:$0xf] (%p45_p5) }
  0x1c   : > { %221 = vst [vmem:[%s200_s17] sm:$0xf] %v220_v0  ;;  %223 = vst [vmem:[%s200_s17 + $0x4] sm:$0xf] %v222_v1  ;;  %v226_v3 = vld [vmem:[%s1072_s16 + $0x24] sm:$0xf] }
  0x1d   : > { %225 = vst [vmem:[%s200_s17 + $0x8] sm:$0xf] %v224_v2  ;;  %v228_v4 = vld [vmem:[%s1072_s16 + $0x30] sm:$0xf]  ;;  %v230_v5 = vld [vmem:[%s1072_s16 + $0x3c] sm:$0xf] }
  0x1e   : > { %227 = vst [vmem:[%s200_s17 + $0xc] sm:$0xf] %v226_v3  ;;  %229 = vst [vmem:[%s200_s17 + $0x10] sm:$0xf] %v228_v4  ;;  %v232_v6 = vld [vmem:[%s1072_s16 + $0x48] sm:$0xf] }
  0x1f   : > { %231 = vst [vmem:[%s200_s17 + $0x14] sm:$0xf] %v230_v5  ;;  %v234_v7 = vld [vmem:[%s1072_s16 + $0x54] sm:$0xf]  ;;  %v236_v8 = vld [vmem:[%s1072_s16 + $0x60] sm:$0xf] }
  0x20   : > { %233 = vst [vmem:[%s200_s17 + $0x18] sm:$0xf] %v232_v6  ;;  %235 = vst [vmem:[%s200_s17 + $0x1c] sm:$0xf] %v234_v7  ;;  %v238_v9 = vld [vmem:[%s1072_s16 + $0x6c] sm:$0xf] }
  0x21   : > { %237 = vst [vmem:[%s200_s17 + $0x20] sm:$0xf] %v236_v8  ;;  %v240_v10 = vld [vmem:[%s1072_s16 + $0x78] sm:$0xf]  ;;  %v242_v11 = vld [vmem:[%s1072_s16 + $0x84] sm:$0xf] }
  0x22   : > { %239 = vst [vmem:[%s200_s17 + $0x24] sm:$0xf] %v238_v9  ;;  %241 = vst [vmem:[%s200_s17 + $0x28] sm:$0xf] %v240_v10  ;;  %v244_v12 = vld [vmem:[%s1072_s16 + $0x90] sm:$0xf] }
  0x23   : > { %243 = vst [vmem:[%s200_s17 + $0x2c] sm:$0xf] %v242_v11  ;;  %v246_v13 = vld [vmem:[%s1072_s16 + $0x9c] sm:$0xf]  ;;  %v248_v14 = vld [vmem:[%s1072_s16 + $0xa8] sm:$0xf] }
  0x24   : > { %245 = vst [vmem:[%s200_s17 + $0x30] sm:$0xf] %v244_v12  ;;  %247 = vst [vmem:[%s200_s17 + $0x34] sm:$0xf] %v246_v13  ;;  %v250_v15 = vld [vmem:[%s1072_s16 + $0xb4] sm:$0xf] }
  0x25   : > { %249 = vst [vmem:[%s200_s17 + $0x38] sm:$0xf] %v248_v14  ;;  %251 = vst [vmem:[%s200_s17 + $0x3c] sm:$0xf] %v250_v15 }
  0x26 PF: > { %p753_p9 = scmp.ge.s32.totalorder %s974_s24, 1  ;;  %p305_p10 = scmp.lt.s32.totalorder %s974_s24, 7 }
  0x28   : > { %p306_p11 = pnand %p753_p9, %p305_p10 }
  0x29   : > { %v399_v16 = vld [vmem:[%s1227_s4] sm:$0xff] (!%p306_p11)  ;;  %v976_v18 = vmov (!%p306_p11), 0   ;;  %v400_v19 = vld [vmem:[%s1227_s4 + $0x8] sm:$0xff] (!%p306_p11)  ;;  %v462_v23 = vld [vmem:[%s1225_s2 + $0x18] sm:$0xff] (!%p306_p11)  ;;  %s312_s27 = sand.u32 (!%p306_p11), 1, %s950_s18  }
  0x2a   : > { %309 = sbr.rel (%p306_p11) target bundleno = 442 (0x1ba), region = 77  ;;  %v371_v17 = vld [vmem:[%s1226_s3] sm:$0xff] (!%p306_p11)  ;;  %915 = vset.pattern.permute.xlu1 (!%p306_p11), %v976_v18  ;;  %914 = vset.pattern.permute.xlu0 (!%p306_p11), %v976_v18  ;;  %v372_v20 = vld [vmem:[%s1226_s3 + $0x8] sm:$0xff] (!%p306_p11)  ;;  %v461_v24 = vld [vmem:[%s1225_s2 + $0x10] sm:$0xff] (!%p306_p11)  ;;  %s1135_s28 = sshll.u32 (!%p306_p11), %s312_s27, 6 }
  0x2b   : > { %403 = vperm.xlu1 (!%p306_p11), %915, %v399_v16   ;;  %375 = vperm.xlu0 (!%p306_p11), %914, %v371_v17   ;;  %v460_v21 = vld [vmem:[%s1225_s2 + $0x8] sm:$0xff] (!%p306_p11)  ;;  %v459_v22 = vld [vmem:[%s1225_s2] sm:$0xff] (!%p306_p11)  ;;  %v466_v27 = vld [vmem:[%s1225_s2 + $0x38] sm:$0xff] (!%p306_p11)  ;;  %s1138_s30 = scalar_lea.vmem (!%p306_p11), [#allocation2], %s1135_s28  ;;  %s337_s10 = scalar_lea.vmem (!%p306_p11), [#allocation3], %s1135_s28 }
  0x2c   : > { %v464_v25 = vld [vmem:[%s1225_s2 + $0x28] sm:$0xff] (!%p306_p11)  ;;  %v463_v26 = vld [vmem:[%s1225_s2 + $0x20] sm:$0xff] (!%p306_p11)  ;;  %v465_v28 = vld [vmem:[%s1225_s2 + $0x30] sm:$0xff] (!%p306_p11) }
  0x2d   : > { %v916_v29 = vld [vmem:[%s1224_s1] sm:$0xff] (!%p306_p11)   ;;  %v917_v30 = vld [vmem:[%s1224_s1 + $0x10] sm:$0xff] (!%p306_p11)   ;;  %v796_v32 = vld [vmem:[%s1138_s30 + $0x8] sm:$0xff] (!%p306_p11)  }
  0x2e   : > { %831 = vmatprep.mubr.bf16.mxu0 (!%p306_p11), %v916_v29  ;;  %835 = vmatprep.mubr.bf16.mxu1 (!%p306_p11), %v917_v30  ;;  %v765_v31 = vld [vmem:[%s1138_s30] sm:$0xff] (!%p306_p11)   ;;  %v770_v34 = vunpack.c.l.bf16 (!%p306_p11), %v796_v32  ;;  %v797_v37 = vld [vmem:[%s1138_s30 + $0x10] sm:$0xff] (!%p306_p11)   ;;  %v771_v40 = vunpack.c.h.bf16 (!%p306_p11), %v796_v32  ;;  %v798_v44 = vld [vmem:[%s1138_s30 + $0x18] sm:$0xff] (!%p306_p11)  }
  0x2f   : > { %408 = vperm.xlu1 (!%p306_p11), %915, %v400_v19   ;;  %380 = vperm.xlu0 (!%p306_p11), %914, %v372_v20   ;;  %v766_v33 = vunpack.c.l.bf16 (!%p306_p11), %v765_v31  ;;  %v767_v38 = vunpack.c.h.bf16 (!%p306_p11), %v765_v31  ;;  %v775_v41 = vunpack.c.h.bf16 (!%p306_p11), %v797_v37  ;;  %v774_v43 = vunpack.c.l.bf16 (!%p306_p11), %v797_v37  ;;  %v799_v57 = vld [vmem:[%s1138_s30 + $0x20] sm:$0xff] (!%p306_p11)   ;;  %v800_v5 = vld [vmem:[%s1138_s30 + $0x28] sm:$0xff] (!%p306_p11)   ;;  %v801_v15 = vld [vmem:[%s1138_s30 + $0x30] sm:$0xff] (!%p306_p11)  }
  0x30   : > { %v779_v49 = vunpack.c.h.bf16 (!%p306_p11), %v798_v44  ;;  %v778_v52 = vunpack.c.l.bf16 (!%p306_p11), %v798_v44  ;;  %v783_v59 = vunpack.c.h.bf16 (!%p306_p11), %v799_v57  ;;  %v782_v0 = vunpack.c.l.bf16 (!%p306_p11), %v799_v57 }
  0x31   : > { %v787_v6 = vunpack.c.h.bf16 %v800_v5  ;;  %v786_v14 = vunpack.c.l.bf16 %v800_v5  ;;  %v791_v16 = vunpack.c.h.bf16 %v801_v15  ;;  %s856_s11 = smul.u32 (%p1055_p6), 24, %s962_s21 }
  0x33   : > { %474 = vperm.xlu1 %915, %v460_v21   ;;  %469 = vperm.xlu0 %914, %v459_v22   ;;  %s612_s12 = sadd.s32 (%p1055_p6), %s958_s20, %s856_s11 }
  0x34   : > { %s761_s13 = sshll.u32 (%p1055_p6), %s612_s12, 3 }
  0x35   : > { %s614_s16 = scalar_lea.vmem (%p1055_p6), %s1228_s5, %s761_s13 }
  0x37   : > { %484 = vperm.xlu1 %915, %v462_v23   ;;  %479 = vperm.xlu0 %914, %v461_v24   ;;  %v790_v24 = vunpack.c.l.bf16 %v801_v15 }
  0x3b   : > { %494 = vperm.xlu1 %915, %v464_v25   ;;  %489 = vperm.xlu0 %914, %v463_v26   ;;  %v802_v25 = vld [vmem:[%s1138_s30 + $0x38] sm:$0xff]  }
  0x3c   : > { %v795_v26 = vunpack.c.h.bf16 %v802_v25 }
  0x3f   : > { %504 = vperm.xlu1 %915, %v466_v27   ;;  %499 = vperm.xlu0 %914, %v465_v28  }
  0xaa   : > { %v1142_v35 = vpop.permute.xlu1 %403  ;;  %v1144_v36 = vpop.permute.xlu0 %375 }
  0xab   : > { %v383_v39 = vmul.f32 %v766_v33, %v1144_v36  ;;  %v385_v42 = vmul.f32 %v770_v34, %v1144_v36  ;;  %v387_v56 = vmul.f32 %v774_v43, %v1144_v36  ;;  %v389_v4 = vmul.f32 %v778_v52, %v1144_v36 }
  0xac   : > { %v391_v13 = vmul.f32 %v782_v0, %v1144_v36  ;;  %v393_v23 = vmul.f32 %v786_v14, %v1144_v36  ;;  %v395_v33 = vmul.f32 %v790_v24, %v1144_v36  ;;  %v794_v34 = vunpack.c.l.bf16 %v802_v25 }
  0xad   : > { %v411_v46 = vadd.f32 %v1142_v35, %v383_v39  ;;  %v413_v54 = vadd.f32 %v1142_v35, %v385_v42  ;;  %v415_v3 = vadd.f32 %v1142_v35, %v387_v56  ;;  %v417_v12 = vadd.f32 %v1142_v35, %v389_v4 }
  0xae   : > { %v1150_v45 = vpop.permute.xlu0 %380  ;;  %v1155_v50 = vpop.permute.xlu1 %408  ;;  %v419_v22 = vadd.f32 %v1142_v35, %v391_v13  ;;  %v421_v32 = vadd.f32 %v1142_v35, %v393_v23  ;;  %v423_v42 = vadd.f32 %v1142_v35, %v395_v33  ;;  %v397_v43 = vmul.f32 %v794_v34, %v1144_v36  ;;  %v918_v36 = vld [vmem:[%s1224_s1 + $0x8] sm:$0xff]  }
  0xaf   : > { %v384_v47 = vmul.f32 %v767_v38, %v1150_v45  ;;  %v386_v48 = vmul.f32 %v771_v40, %v1150_v45  ;;  %v388_v51 = vmul.f32 %v775_v41, %v1150_v45  ;;  %v427_v58 = vmax.f32 %v411_v46, 0.0 }
  0xb0   : > { %v390_v63 = vmul.f32 %v779_v49, %v1150_v45  ;;  %v429_v2 = vmax.f32 %v413_v54, 0.0  ;;  %v392_v10 = vmul.f32 %v783_v59, %v1150_v45  ;;  %v431_v11 = vmax.f32 %v415_v3, 0.0 }
  0xb1   : > { %v412_v53 = vadd.f32 %v1155_v50, %v384_v47  ;;  %v414_v55 = vadd.f32 %v1155_v50, %v386_v48  ;;  %v416_v62 = vadd.f32 %v1155_v50, %v388_v51  ;;  %v394_v20 = vmul.f32 %v787_v6, %v1150_v45 }
  0xb2   : > { %v418_v9 = vadd.f32 %v1155_v50, %v390_v63  ;;  %v420_v19 = vadd.f32 %v1155_v50, %v392_v10  ;;  %v433_v21 = vmax.f32 %v417_v12, 0.0  ;;  %v396_v30 = vmul.f32 %v791_v16, %v1150_v45  ;;  %v470_v54 = vpop.permute.xlu0 %469 }
  0xb3   : > { %v428_v60 = vmax.f32 %v412_v53, 0.0  ;;  %v430_v61 = vmax.f32 %v414_v55, 0.0  ;;  %v432_v8 = vmax.f32 %v416_v62, 0.0  ;;  %v422_v29 = vadd.f32 %v1155_v50, %v394_v20 }
  0xb4   : > { %v434_v18 = vmax.f32 %v418_v9, 0.0  ;;  %v436_v28 = vmax.f32 %v420_v19, 0.0  ;;  %v435_v31 = vmax.f32 %v419_v22, 0.0  ;;  %v424_v39 = vadd.f32 %v1155_v50, %v396_v30 }
  0xb5   : > { %v443_v1 = vpack.c.bf16 %v428_v60, %v427_v58  ;;  %v444_v7 = vpack.c.bf16 %v430_v61, %v429_v2  ;;  %v445_v17 = vpack.c.bf16 %v432_v8, %v431_v11  ;;  %v438_v38 = vmax.f32 %v422_v29, 0.0 }
  0xb6   : > { %v446_v27 = vpack.c.bf16 %v434_v18, %v433_v21  ;;  %v447_v37 = vpack.c.bf16 %v436_v28, %v435_v31  ;;  %v398_v40 = vmul.f32 %v795_v26, %v1150_v45  ;;  %v437_v41 = vmax.f32 %v421_v32, 0.0  ;;  %v480_v56 = vpop.permute.xlu0 %479 }
  0xb7   : > { %815 = vmatprep.subr.bf16.mxu0 %v443_v1  ;;  %839 = vmatprep.subr.bf16.mxu1 %v443_v1  ;;  %v440_v46 = vmax.f32 %v424_v39, 0.0  ;;  %v439_v48 = vmax.f32 %v423_v42, 0.0  ;;  %v425_v45 = vadd.f32 %v1142_v35, %v397_v43  ;;  %v919_v35 = vld [vmem:[%s1224_s1 + $0x18] sm:$0xff]  }
  0xb8   : > { %816 = vmatpush3.bf16.msra.mxu0 %v443_v1  ;;  %847 = vmatpush3.bf16.msra.mxu1 %v443_v1  ;;  %v448_v44 = vpack.c.bf16 %v438_v38, %v437_v41  ;;  %v426_v47 = vadd.f32 %v1155_v50, %v398_v40  ;;  %v475_v50 = vpop.permute.xlu1 %474 }
  0xb9   : > { %817 = vmatprep.subr.bf16.mxu0 %v444_v7  ;;  %840 = vmatprep.subr.bf16.mxu1 %v444_v7  ;;  %v449_v49 = vpack.c.bf16 %v440_v46, %v439_v48  ;;  %v441_v52 = vmax.f32 %v425_v45, 0.0 }
  0xba   : > { %v442_v51 = vmax.f32 %v426_v47, 0.0  ;;  %v490_v58 = vpop.permute.xlu0 %489 }
  0xbc   : > { %818 = vmatpush3.bf16.msra.mxu0 %v444_v7  ;;  %848 = vmatpush3.bf16.msra.mxu1 %v444_v7  ;;  %v450_v53 = vpack.c.bf16 %v442_v51, %v441_v52  ;;  %v485_v55 = vpop.permute.xlu1 %484 }
  0xbd   : > { %819 = vmatprep.subr.bf16.mxu0 %v445_v17  ;;  %841 = vmatprep.subr.bf16.mxu1 %v445_v17 }
  0xbe   : > { %v500_v60 = vpop.permute.xlu0 %499 }
  0xc0   : > { %820 = vmatpush3.bf16.msra.mxu0 %v445_v17  ;;  %849 = vmatpush3.bf16.msra.mxu1 %v445_v17  ;;  %v495_v57 = vpop.permute.xlu1 %494 }
  0xc1   : > { %821 = vmatprep.subr.bf16.mxu0 %v446_v27  ;;  %842 = vmatprep.subr.bf16.mxu1 %v446_v27 }
  0xc4   : > { %822 = vmatpush3.bf16.msra.mxu0 %v446_v27  ;;  %850 = vmatpush3.bf16.msra.mxu1 %v446_v27  ;;  %v505_v59 = vpop.permute.xlu1 %504 }
  0xc5   : > { %823 = vmatprep.subr.bf16.mxu0 %v447_v37  ;;  %843 = vmatprep.subr.bf16.mxu1 %v447_v37 }
  0xc8   : > { %824 = vmatpush3.bf16.msra.mxu0 %v447_v37  ;;  %851 = vmatpush3.bf16.msra.mxu1 %v447_v37 }
  0xc9   : > { %825 = vmatprep.subr.bf16.mxu0 %v448_v44  ;;  %844 = vmatprep.subr.bf16.mxu1 %v448_v44 }
  0xcc   : > { %826 = vmatpush3.bf16.msra.mxu0 %v448_v44  ;;  %852 = vmatpush3.bf16.msra.mxu1 %v448_v44 }
  0xcd   : > { %827 = vmatprep.subr.bf16.mxu0 %v449_v49  ;;  %845 = vmatprep.subr.bf16.mxu1 %v449_v49 }
  0xd0   : > { %828 = vmatpush3.bf16.msra.mxu0 %v449_v49  ;;  %853 = vmatpush3.bf16.msra.mxu1 %v449_v49 }
  0xd1   : > { %829 = vmatprep.subr.bf16.mxu0 %v450_v53  ;;  %846 = vmatprep.subr.bf16.mxu1 %v450_v53 }
  0xd4   : > { %830 = vmatpush3.bf16.msra.mxu0 %v450_v53  ;;  %854 = vmatpush3.bf16.msra.mxu1 %v450_v53 }
  0xd7   : > { %832 = vmatmul.mubr.bf16.vlgmr.msra.gmra.mrb[0].mxu0 %v918_v36  ;;  %836 = vmatmul.mubr.bf16.vlgmr.msra.gmra.mrb[0].mxu1 %v919_v35 }
 0x1aa   : > { %v833_v61 = vpop.f32.mrb[0].mxu0  ;;  %v837_v62 = vpop.f32.mrb[0].mxu1  ;;  %610 = sbr.rel (!%p1055_p6) target bundleno = 442 (0x1ba), region = 85 }
 0x1ab   : > { %v574_v63 = vadd.f32 %v833_v61, %v480_v56  ;;  %v590_v0 = vadd.f32 %v837_v62, %v500_v60  ;;  %v565_v1 = vpop.f32.mrb[1].mxu0  ;;  %v581_v2 = vpop.f32.mrb[1].mxu1 }
 0x1ac   : > { %v566_v3 = vadd.f32 %v565_v1, %v470_v54  ;;  %v582_v4 = vadd.f32 %v581_v2, %v490_v58  ;;  %v834_v5 = vpop.f32.mrb[2].mxu0  ;;  %v838_v6 = vpop.f32.mrb[2].mxu1 }
 0x1ad   : > { %598 = vst [vmem:[%s337_s10 + $0x10] sm:$0xff] %v574_v63  ;;  %602 = vst [vmem:[%s337_s10 + $0x30] sm:$0xff] %v590_v0  ;;  %v577_v7 = vadd.f32 %v834_v5, %v485_v55  ;;  %v593_v8 = vadd.f32 %v838_v6, %v505_v59  ;;  %v568_v9 = vpop.f32.mrb[3].mxu0  ;;  %v584_v10 = vpop.f32.mrb[3].mxu1 }
 0x1ae   : > { %596 = vst [vmem:[%s337_s10] sm:$0xff] %v566_v3  ;;  %600 = vst [vmem:[%s337_s10 + $0x20] sm:$0xff] %v582_v4  ;;  %v569_v11 = vadd.f32 %v568_v9, %v475_v50  ;;  %v585_v12 = vadd.f32 %v584_v10, %v495_v57 }
 0x1af   : > { %599 = vst [vmem:[%s337_s10 + $0x18] sm:$0xff] %v577_v7  ;;  %603 = vst [vmem:[%s337_s10 + $0x38] sm:$0xff] %v593_v8 }
 0x1b0   : > { %597 = vst [vmem:[%s337_s10 + $0x8] sm:$0xff] %v569_v11  ;;  %601 = vst [vmem:[%s337_s10 + $0x28] sm:$0xff] %v585_v12 }
 0x1b4   : > { %v660_v15 = vld [vmem:[%s337_s10 + $0x10] sm:$0xff] }
 0x1b5   : > { %v656_v13 = vld [vmem:[%s337_s10] sm:$0xff]  ;;  %v668_v19 = vld [vmem:[%s337_s10 + $0x30] sm:$0xff]  ;;  %661 = vst [vmem:[%s614_s16 + $0x30] sm:$0xff] %v660_v15 }
 0x1b6   : > { %v662_v16 = vld [vmem:[%s337_s10 + $0x18] sm:$0xff]  ;;  %v664_v17 = vld [vmem:[%s337_s10 + $0x20] sm:$0xff]  ;;  %657 = vst [vmem:[%s614_s16] sm:$0xff] %v656_v13  ;;  %669 = vst [vmem:[%s614_s16 + $0x90] sm:$0xff] %v668_v19 }
 0x1b7   : > { %v658_v14 = vld [vmem:[%s337_s10 + $0x8] sm:$0xff]  ;;  %v670_v20 = vld [vmem:[%s337_s10 + $0x38] sm:$0xff]  ;;  %663 = vst [vmem:[%s614_s16 + $0x48] sm:$0xff] %v662_v16  ;;  %665 = vst [vmem:[%s614_s16 + $0x60] sm:$0xff] %v664_v17 }
 0x1b8   : > { %v666_v18 = vld [vmem:[%s337_s10 + $0x28] sm:$0xff]  ;;  %659 = vst [vmem:[%s614_s16 + $0x18] sm:$0xff] %v658_v14  ;;  %671 = vst [vmem:[%s614_s16 + $0xa8] sm:$0xff] %v670_v20 }
 0x1b9   : > { %667 = vst [vmem:[%s614_s16 + $0x78] sm:$0xff] %v666_v18 }
 0x1ba PF: > { %s15_s24 = sadd.s32 1, %s974_s24   ;;  %s1230_s18 = smov %s954_s19 }
 0x1bb   : > { %p12_p12 = scmp.ge.s32.totalorder %s15_s24, 8   ;;  %s1231_s19 = smov %s1063_s8 }
 0x1bc   : > { %s1232_s20 = smov %s966_s22  ;;  %s1233_s21 = smov %s970_s23 }
 0x1bd   : > { %s1234_s22 = smov %s1237_s25  ;;  %s1235_s23 = smov %s1241_s26 }
 0x1be   :  { %14 = sbr.rel (!%p12_p12) target bundleno = 4 (0x4), region = 154 }

// kernel: spatio_temporal_conv.2
= control target key start
LH: loop header
LB: loop body
LE: loop exit
PB: predicated region body
PF: predicated region fallthrough
CT: control target
= control target key end

     0   :  { %s926_s15 = smov 0   ;;  %s928_s16 = smov 0   ;;  %s1035_s0 = inlined_call_operand.vmem [shape: bf16[2,8,8,422], index: 0, kind: input, shape index: {}]   ;;  %s1036_s1 = inlined_call_operand.vmem [shape: bf16[16,72], index: 1, kind: input, shape index: {}]   ;;  %s1037_s2 = inlined_call_operand.vmem [shape: f32[1,384], index: 2, kind: input, shape index: {}]   ;;  %s1038_s3 = inlined_call_operand.vmem [shape: bf16[2,8,16,384], index: 3, kind: output, shape index: {0}]   ;;  %s1039_s4 = inlined_call_operand.vmem [shape: f32[2,8,16,2], index: 4, kind: output, shape index: {1}]  }
   0x1   :  { %s930_s17 = smov 0   ;;  %s932_s18 = smov 0  }
   0x2   :  { %s934_s19 = smov 0  }
   0x3 LB: > { %s24_s20 = sadd.s32 1, %s880_s17  ;;  %s27_s21 = sadd.s32 1, %s884_s18  ;;  %s888_s19 = sphi %s934_s19, %s15_s19   ;;  %s884_s18 = sphi %s932_s18, %s1043_s18   ;;  %s880_s17 = sphi %s930_s17, %s1042_s17   ;;  %s876_s16 = sphi %s928_s16, %s1041_s16   ;;  %s872_s15 = sphi %s926_s15, %s1040_s15  }
   0x4   : > { %p25_p0 = scmp.ge.s32.totalorder %s24_s20, 8  ;;  %p746_p1 = scmp.ge.s32.totalorder %s888_s19, 1 }
   0x5   : > { %p187_p2 = scmp.lt.s32.totalorder %s888_s19, 17 }
   0x6   : > { %s1045_s20 = smov (%p25_p0, %s24_s20), 0  ;;  %s1047_s21 = smov (!%p25_p0, %s27_s21), %s884_s18 }
   0x7   : > { %p188_p3 = pnand %p746_p1, %p187_p2  ;;  %p29_p4 = scmp.ge.s32.totalorder %s1047_s21, 2 }
   0x8   : > { %p230_p5 = scmp.lt.s32.totalorder (!%p188_p3), %s876_s16, 1  ;;  %p232_p6 = scmp.lt.s32.totalorder (!%p188_p3), %s872_s15, 7  ;;  %v890_v0 = vmov (!%p188_p3), 0.0   ;;  %v898_v7 = vmov (!%p188_p3), 0   ;;  %vm899_vm0 = vmmov (!%p188_p3), 0   ;;  %vm278_vm1 = vcmask (!%p188_p3), 1039360  }
   0x9   : > { %s1049_s21 = smov (%p29_p4, %s1047_s21), 0  ;;  %191 = sbr.rel (%p188_p3) target bundleno = 575 (0x23f), region = 32 }
   0xa   : > { %778 = vmatprep.subr.bf16.mxu1 (!%p188_p3), %v890_v0  ;;  %s891_s29 = smov (!%p188_p3), 127   ;;  %s892_s30 = smov (!%p188_p3), 126   ;;  %467 = vmatprep.mubr.bf16.mxu0 (!%p188_p3), %v898_v7  ;;  %vm366_vm2 = vcmask (!%p188_p3), 1043456   ;;  %vm290_vm3 = vcmask (!%p188_p3), 1031168   ;;  %vm302_vm4 = vcmask (!%p188_p3), 900096   ;;  %vm314_vm5 = vcmask (!%p188_p3), 891904  }
   0xb   : > { %s893_s5 = smov (!%p188_p3), 110   ;;  %s894_s6 = smov (!%p188_p3), 109   ;;  %788 = vmatprep.mubr.msk.bf16.mxu1 (!%p188_p3), %vm899_vm0, %v890_v0  ;;  %vm326_vm6 = vcmask (!%p188_p3), 883712   ;;  %vm338_vm7 = vcmask (!%p188_p3), 752640   ;;  %vm350_vm8 = vcmask (!%p188_p3), 744448   ;;  %vm362_vm9 = vcmask (!%p188_p3), 736256  }
   0xc   : > { %s895_s7 = smov (!%p188_p3), 108   ;;  %s896_s8 = smov (!%p188_p3), 92   ;;  %vm422_vm10 = vcmask (!%p188_p3), 588800   ;;  %vm588_vm11 = vcmask (!%p188_p3), 7168   ;;  %vm591_vm12 = vcmask (!%p188_p3), 15360  }
   0xd   : > { %s897_s9 = smov (!%p188_p3), 91   ;;  %s900_s10 = smov (!%p188_p3), 90  }
  0x10   : > { %s1051_s16 = smov (!%p230_p5, %s876_s16), 1  ;;  %s1053_s15 = smov (!%p232_p6, %s872_s15), 7 }
  0x11   : > { %s748_s22 = sshll.u32 %s1051_s16, 5  ;;  %s747_s23 = sshll.u32 %s1053_s15, 2 }
  0x12   : > { %s236_s24 = sadd.s32 %s748_s22, %s747_s23  ;;  %s792_s13 = smul.u32 6, %s1053_s15 }
  0x13   : > { %s749_s25 = sshll.u32 %s236_s24, 2  ;;  %s793_s14 = smul.u32 48, %s1051_s16 }
  0x14   : > { %s238_s28 = scalar_lea.vmem %s1035_s0, %s749_s25 }
  0x15   : > { %v258_v1 = vld [vmem:[%s238_s28] sm:$0xff]  ;;  %v259_v2 = vld [vmem:[%s238_s28 + $0x8] sm:$0xff]  ;;  %s245_s24 = sadd.s32 %s793_s14, %s792_s13 }
  0x16   : > { %v755_v3 = vcombine.high %v258_v1, %v258_v1  ;;  %v754_v4 = vcombine.low %v258_v1, %v258_v1  ;;  %v756_v5 = vcombine.low %v259_v2, %v259_v2  ;;  %v757_v6 = vcombine.high %v259_v2, %v259_v2  ;;  %s750_s25 = sshll.u32 %s245_s24, 2 }
  0x17   : > { %s247_s28 = scalar_lea.vmem %s1038_s3, %s750_s25 }
  0x18   : > { %272 = vrot.lane.b32.xlu0 %v755_v3, %s891_s29  ;;  %270 = vrot.lane.b32.xlu1 %v754_v4, %s891_s29 }
  0x1c   : > { %274 = vrot.lane.b32.xlu0 %v756_v5, %s891_s29  ;;  %276 = vrot.lane.b32.xlu1 %v757_v6, %s891_s29  ;;  %s751_s29 = sshll.u32 %s1053_s15, 1 }
  0x20   : > { %284 = vrot.lane.b32.xlu0 %v755_v3, %s892_s30  ;;  %286 = vrot.lane.b32.xlu1 %v756_v5, %s892_s30 }
  0x24   : > { %296 = vrot.lane.b32.xlu0 %v755_v3, %s893_s5  ;;  %298 = vrot.lane.b32.xlu1 %v756_v5, %s893_s5 }
  0x28   : > { %282 = vrot.lane.b32.xlu0 %v754_v4, %s892_s30  ;;  %294 = vrot.lane.b32.xlu1 %v754_v4, %s893_s5 }
  0x2c   : > { %288 = vrot.lane.b32.xlu0 %v757_v6, %s892_s30  ;;  %300 = vrot.lane.b32.xlu1 %v757_v6, %s893_s5  ;;  %s752_s30 = sshll.u32 %s1051_s16, 4 }
  0x2d   : > { %s254_s5 = sadd.s32 %s752_s30, %s751_s29 }
  0x30   : > { %308 = vrot.lane.b32.xlu0 %v755_v3, %s894_s6  ;;  %310 = vrot.lane.b32.xlu1 %v756_v5, %s894_s6 }
  0x34   : > { %320 = vrot.lane.b32.xlu0 %v755_v3, %s895_s7  ;;  %322 = vrot.lane.b32.xlu1 %v756_v5, %s895_s7 }
  0x38   : > { %306 = vrot.lane.b32.xlu0 %v754_v4, %s894_s6  ;;  %318 = vrot.lane.b32.xlu1 %v754_v4, %s895_s7 }
  0x3c   : > { %312 = vrot.lane.b32.xlu0 %v757_v6, %s894_s6  ;;  %324 = vrot.lane.b32.xlu1 %v757_v6, %s895_s7  ;;  %s753_s6 = sshll.u32 %s254_s5, 3 }
  0x40   : > { %332 = vrot.lane.b32.xlu0 %v755_v3, %s896_s8  ;;  %334 = vrot.lane.b32.xlu1 %v756_v5, %s896_s8 }
  0x44   : > { %344 = vrot.lane.b32.xlu0 %v755_v3, %s897_s9  ;;  %346 = vrot.lane.b32.xlu1 %v756_v5, %s897_s9 }
  0x48   : > { %330 = vrot.lane.b32.xlu0 %v754_v4, %s896_s8  ;;  %342 = vrot.lane.b32.xlu1 %v754_v4, %s897_s9 }
  0x4c   : > { %336 = vrot.lane.b32.xlu0 %v757_v6, %s896_s8  ;;  %348 = vrot.lane.b32.xlu1 %v757_v6, %s897_s9  ;;  %s256_s9 = scalar_lea.vmem %s1039_s4, %s753_s6 }
  0x50   : > { %354 = vrot.lane.b32.xlu0 %v754_v4, %s900_s10  ;;  %356 = vrot.lane.b32.xlu1 %v755_v3, %s900_s10 }
  0x54   : > { %358 = vrot.lane.b32.xlu0 %v756_v5, %s900_s10  ;;  %360 = vrot.lane.b32.xlu1 %v757_v6, %s900_s10 }
  0x8a   : > { %v273_v8 = vpop.permute.xlu0 %272  ;;  %v271_v9 = vpop.permute.xlu1 %270 }
  0x8b   : > { %v279_v10 = vsel %vm278_vm1, %v271_v9, %v273_v8 }
  0x8c   : > { %v369_v17 = vsel %vm366_vm2, %v754_v4, %v279_v10 }
  0x8e   : > { %v275_v11 = vpop.permute.xlu0 %274  ;;  %v277_v12 = vpop.permute.xlu1 %276 }
  0x8f   : > { %v280_v13 = vsel %vm278_vm1, %v273_v8, %v275_v11  ;;  %v281_v14 = vsel %vm278_vm1, %v275_v11, %v277_v12 }
  0x90   : > { %v373_v15 = vsel %vm366_vm2, %v755_v3, %v280_v13  ;;  %v377_v16 = vsel %vm366_vm2, %v756_v5, %v281_v14 }
  0x91   : > { %435 = vmatprep.subr.bf16.mxu0 %v373_v15  ;;  %779 = vmatpush3.bf16.msra.mxu1 %v377_v16  ;;  %v849_v15 = vld [vmem:[%s1036_s1] sm:$0xff]  }
  0x92   : > { %v285_v18 = vpop.permute.xlu0 %284  ;;  %436 = vmatpush1.bf16.msra.mxu0 %v369_v17  ;;  %v287_v19 = vpop.permute.xlu1 %286  ;;  %780 = vmatprep.subr.bf16.mxu1 %v890_v0 }
  0x93   : > { %v292_v22 = vsel %vm290_vm3, %v285_v18, %v287_v19 }
  0x96   : > { %v297_v20 = vpop.permute.xlu0 %296  ;;  %v299_v21 = vpop.permute.xlu1 %298 }
  0x97   : > { %v304_v23 = vsel %vm302_vm4, %v297_v20, %v299_v21 }
  0x98   : > { %v385_v24 = vsel %vm366_vm2, %v292_v22, %v304_v23 }
  0x99   : > { %437 = vmatprep.subr.bf16.mxu0 %v385_v24 }
  0x9a   : > { %v283_v25 = vpop.permute.xlu0 %282  ;;  %v295_v26 = vpop.permute.xlu1 %294 }
  0x9b   : > { %v291_v27 = vsel %vm290_vm3, %v283_v25, %v285_v18  ;;  %v303_v28 = vsel %vm302_vm4, %v295_v26, %v297_v20 }
  0x9c   : > { %v381_v29 = vsel %vm366_vm2, %v291_v27, %v303_v28 }
  0x9d   : > { %438 = vmatpush1.bf16.msra.mxu0 %v381_v29 }
  0x9e   : > { %v289_v30 = vpop.permute.xlu0 %288  ;;  %v301_v31 = vpop.permute.xlu1 %300 }
  0x9f   : > { %v293_v32 = vsel %vm290_vm3, %v287_v19, %v289_v30  ;;  %v305_v33 = vsel %vm302_vm4, %v299_v21, %v301_v31  ;;  %v543_v19 = vld [vmem:[%s1037_s2] sm:$0x7] }
  0xa0   : > { %v389_v34 = vsel %vm366_vm2, %v293_v32, %v305_v33 }
  0xa1   : > { %781 = vmatpush3.bf16.msra.mxu1 %v389_v34 }
  0xa2   : > { %v309_v35 = vpop.permute.xlu0 %308  ;;  %v311_v36 = vpop.permute.xlu1 %310  ;;  %782 = vmatprep.subr.bf16.mxu1 %v890_v0 }
  0xa3   : > { %v316_v39 = vsel %vm314_vm5, %v309_v35, %v311_v36 }
  0xa6   : > { %v321_v37 = vpop.permute.xlu0 %320  ;;  %v323_v38 = vpop.permute.xlu1 %322 }
  0xa7   : > { %v328_v40 = vsel %vm326_vm6, %v321_v37, %v323_v38 }
  0xa8   : > { %v397_v41 = vsel %vm366_vm2, %v316_v39, %v328_v40 }
  0xa9   : > { %439 = vmatprep.subr.bf16.mxu0 %v397_v41 }
  0xaa   : > { %v307_v42 = vpop.permute.xlu0 %306  ;;  %v319_v43 = vpop.permute.xlu1 %318 }
  0xab   : > { %v315_v44 = vsel %vm314_vm5, %v307_v42, %v309_v35  ;;  %v327_v45 = vsel %vm326_vm6, %v319_v43, %v321_v37 }
  0xac   : > { %v393_v46 = vsel %vm366_vm2, %v315_v44, %v327_v45 }
  0xad   : > { %440 = vmatpush1.bf16.msra.mxu0 %v393_v46 }
  0xae   : > { %v313_v47 = vpop.permute.xlu0 %312  ;;  %v325_v48 = vpop.permute.xlu1 %324 }
  0xaf   : > { %v317_v49 = vsel %vm314_vm5, %v311_v36, %v313_v47  ;;  %v329_v50 = vsel %vm326_vm6, %v323_v38, %v325_v48 }
  0xb0   : > { %v401_v51 = vsel %vm366_vm2, %v317_v49, %v329_v50 }
  0xb1   : > { %783 = vmatpush3.bf16.msra.mxu1 %v401_v51 }
  0xb2   : > { %v333_v52 = vpop.permute.xlu0 %332  ;;  %v335_v53 = vpop.permute.xlu1 %334  ;;  %784 = vmatprep.subr.bf16.mxu1 %v890_v0 }
  0xb3   : > { %v340_v56 = vsel %vm338_vm7, %v333_v52, %v335_v53 }
  0xb6   : > { %v345_v54 = vpop.permute.xlu0 %344  ;;  %v347_v55 = vpop.permute.xlu1 %346 }
  0xb7   : > { %v352_v57 = vsel %vm350_vm8, %v345_v54, %v347_v55 }
  0xb8   : > { %v409_v58 = vsel %vm366_vm2, %v340_v56, %v352_v57 }
  0xb9   : > { %441 = vmatprep.subr.bf16.mxu0 %v409_v58 }
  0xba   : > { %v331_v59 = vpop.permute.xlu0 %330  ;;  %v343_v60 = vpop.permute.xlu1 %342 }
  0xbb   : > { %v339_v61 = vsel %vm338_vm7, %v331_v59, %v333_v52  ;;  %v351_v62 = vsel %vm350_vm8, %v343_v60, %v345_v54 }
  0xbc   : > { %v405_v63 = vsel %vm366_vm2, %v339_v61, %v351_v62 }
  0xbd   : > { %442 = vmatpush1.bf16.msra.mxu0 %v405_v63 }
  0xbe   : > { %v337_v1 = vpop.permute.xlu0 %336  ;;  %v349_v2 = vpop.permute.xlu1 %348 }
  0xbf   : > { %v341_v3 = vsel %vm338_vm7, %v335_v53, %v337_v1  ;;  %v353_v4 = vsel %vm350_vm8, %v347_v55, %v349_v2 }
  0xc0   : > { %v413_v5 = vsel %vm366_vm2, %v341_v3, %v353_v4 }
  0xc1   : > { %785 = vmatpush3.bf16.msra.mxu1 %v413_v5 }
  0xc2   : > { %v355_v6 = vpop.permute.xlu0 %354  ;;  %v357_v7 = vpop.permute.xlu1 %356  ;;  %786 = vmatprep.subr.bf16.mxu1 %v890_v0  ;;  %v545_v0 = vlaneseq }
  0xc3   : > { %v363_v8 = vsel %vm362_vm9, %v355_v6, %v357_v7 }
  0xc4   : > { %v427_v13 = vsel %vm366_vm2, %v363_v8, 0  ;;  %v546_v16 = vshrl.u32 %v545_v0, 7 }
  0xc6   : > { %v359_v9 = vpop.permute.xlu0 %358  ;;  %v361_v10 = vpop.permute.xlu1 %360  ;;  %v547_v17 = vsub.s32 0, %v546_v16  ;;  %v555_v18 = vsub.s32 2, %v546_v16  ;;  %v551_v20 = vsub.s32 1, %v546_v16 }
  0xc7   : > { %v364_v11 = vsel %vm362_vm9, %v357_v7, %v359_v9  ;;  %v365_v12 = vsel %vm362_vm9, %v359_v9, %v361_v10 }
  0xc8   : > { %759 = vmatprep.subr.msk.bf16.mxu0 %vm366_vm2, %v364_v11  ;;  %v433_v14 = vsel %vm366_vm2, %v365_v12, 0  ;;  %v548_v21 = vrot.slane %v543_v19, %v547_v17  ;;  %v556_v22 = vrot.slane %v543_v19, %v555_v18  ;;  %v552_v23 = vrot.slane %v543_v19, %v551_v20 }
  0xc9   : > { %444 = vmatpush1.bf16.msra.mxu0 %v427_v13  ;;  %787 = vmatpush3.bf16.msra.mxu1 %v433_v14 }
  0xcc   : > { %760 = vmatmul.mubr.msk.bf16.vlgmr.msra.gmra.mrb[0].mxu0 %vm422_vm10, %v849_v15  ;;  %789 = vmatmul.mubr.msk.bf16.vlgmr.msra.gmra.mrb[0].mxu1 %vm422_vm10, %v849_v15 }
 0x19f   : > { %v469_v24 = vpop.f32.mrb[0].mxu0  ;;  %v512_v25 = vpop.f32.mrb[0].mxu1 }
 0x1a0   : > { %v560_v26 = vmul.f32 %v548_v21, %v469_v24  ;;  %v769_v27 = vpack.c.bf16 %v512_v25, %v512_v25  ;;  %v471_v28 = vpop.f32.mrb[1].mxu0  ;;  %v790_v29 = vpop.f32.mrb[1].mxu1  ;;  %v562_v30 = vmul.f32 %v556_v22, %v512_v25 }
 0x1a1   : > { %v768_v31 = vpack.c.bf16 %v471_v28, %v469_v24  ;;  %v561_v32 = vmul.f32 %v552_v23, %v471_v28  ;;  %v473_v33 = vpop.f32.mrb[2].mxu0  ;;  %v515_v34 = vpop.f32.mrb[2].mxu1 }
 0x1a2   : > { %v574_v35 = vmul.f32 %v560_v26, %v469_v24  ;;  %540 = vst [vmem:[%s247_s28 + $0x8] sm:$0xf] %v769_v27  ;;  %v563_v36 = vmul.f32 %v548_v21, %v473_v33  ;;  %v771_v37 = vpack.c.bf16 %v515_v34, %v515_v34  ;;  %v475_v38 = vpop.f32.mrb[3].mxu0  ;;  %v791_v39 = vpop.f32.mrb[3].mxu1  ;;  %v565_v40 = vmul.f32 %v556_v22, %v515_v34 }
 0x1a3   : > { %539 = vst [vmem:[%s247_s28] sm:$0xff] %v768_v31  ;;  %v575_v41 = vmul.f32 %v561_v32, %v471_v28  ;;  %v770_v42 = vpack.c.bf16 %v475_v38, %v473_v33  ;;  %v564_v43 = vmul.f32 %v552_v23, %v475_v38  ;;  %v566_v44 = vadd.f32 %v561_v32, %v560_v26 }
 0x1a4   : > { %v577_v45 = vmul.f32 %v563_v36, %v473_v33  ;;  %542 = vst [vmem:[%s247_s28 + $0x14] sm:$0xf] %v771_v37  ;;  %v576_v46 = vmul.f32 %v562_v30, %v512_v25  ;;  %v579_v53 = vmul.f32 %v565_v40, %v515_v34 }
 0x1a5   : > { %541 = vst [vmem:[%s247_s28 + $0xc] sm:$0xff] %v770_v42  ;;  %v578_v47 = vmul.f32 %v564_v43, %v475_v38  ;;  %v567_v48 = vadd.f32 %v566_v44, %v562_v30  ;;  %v570_v49 = vadd.f32 %v564_v43, %v563_v36  ;;  %v580_v50 = vadd.f32 %v575_v41, %v574_v35 }
 0x1a7   : > { %568 = vadd.xlane.f32.xlu0 %v567_v48  ;;  %v571_v51 = vadd.f32 %v570_v49, %v565_v40  ;;  %v581_v52 = vadd.f32 %v580_v50, %v576_v46  ;;  %v584_v54 = vadd.f32 %v578_v47, %v577_v45 }
 0x1a9   : > { %572 = vadd.xlane.f32.xlu1 %v571_v51  ;;  %v585_v55 = vadd.f32 %v584_v54, %v579_v53 }
 0x1ab   : > { %582 = vadd.xlane.f32.xlu0 %v581_v52 }
 0x1af   : > { %586 = vadd.xlane.f32.xlu0 %v585_v55 }
 0x234   : > { %v569_v56 = vpop.xlane.xlu0 %568 }
 0x236   : > { %v573_v59 = vpop.xlane.xlu1 %572 }
 0x238   : > { %v583_v57 = vpop.xlane.xlu0 %582 }
 0x239   : > { %v589_v58 = vsel %vm588_vm11, %v569_v56, %v583_v57 }
 0x23a   : > { %592 = vst.msk [vmem:[%s256_s9] sm:$0xff] %vm591_vm12, %v589_v58 }
 0x23c   : > { %v587_v60 = vpop.xlane.xlu0 %586 }
 0x23d   : > { %v590_v61 = vsel %vm588_vm11, %v573_v59, %v587_v60 }
 0x23e   : > { %593 = vst.msk [vmem:[%s256_s9 + $0x8] sm:$0xff] %vm591_vm12, %v590_v61 }
 0x23f PF: > { %s15_s19 = sadd.s32 1, %s888_s19   ;;  %s1040_s15 = smov %s880_s17 }
 0x240   : > { %p12_p7 = scmp.ge.s32.totalorder %s15_s19, 18   ;;  %s1041_s16 = smov %s884_s18 }
 0x241   : > { %s1042_s17 = smov %s1045_s20  ;;  %s1043_s18 = smov %s1049_s21 }
 0x242   :  { %14 = sbr.rel (!%p12_p7) target bundleno = 3 (0x3), region = 74 }

</bundles_post_ra>
